<compile_context>
chip_gen: v6e
topology: v6e:2x2x1
jax: 0.10.0
libtpu: 0.0.40
codegen_flags: <defaults>
</compile_context>

<pallas_src>
import functools

import numpy as np
import jax
import jax.numpy as jnp
from jax.experimental import pallas as pl
from jax.experimental.pallas import tpu as pltpu


def _round_up(n: int, m: int) -> int:
    return ((n + m - 1) // m) * m


def _cdiv(a: int, b: int) -> int:
    return (a + b - 1) // b


def _mlp_kernel(x_ref, w1_ref, b1_ref, w2_ref, b2_ref, o_ref, *, mxu_dtype):
    # x_ref:  (TB, D_in)   VMEM  (x's HBM dtype; cast to mxu_dtype here if needed)
    # w1_ref: (D_in, HP)   VMEM  (pre-transposed, hidden padded to HP = mult of 128)
    # b1_ref: (1, HP)      VMEM  f32
    # w2_ref: (HP, OP)     VMEM  (pre-transposed, d_out padded to OP = mult of 128)
    # b2_ref: (1, OP)      VMEM  f32
    # o_ref:  (TB, OP)     VMEM  (lane-dense, unmasked stores)
    x = x_ref[...]
    w1 = w1_ref[...]
    if x.dtype != mxu_dtype:
        x = x.astype(mxu_dtype)          # in-kernel cast: no extra HBM traffic
    if w1.dtype != mxu_dtype:
        w1 = w1.astype(mxu_dtype)
    h = jnp.dot(x, w1, preferred_element_type=jnp.float32)
    h = jnp.maximum(h + b1_ref[...], 0.0)                   # f32 bias + ReLU (VPU)

    w2 = w2_ref[...]
    if w2.dtype != mxu_dtype:
        w2 = w2.astype(mxu_dtype)
    y = jnp.dot(h.astype(mxu_dtype), w2, preferred_element_type=jnp.float32)
    o_ref[...] = jnp.maximum(y + b2_ref[...], 0.0).astype(o_ref.dtype)  # bias + ReLU


def prepare_params(w1, b1, w2, b2, param_dtype=jnp.float32):
    """One-time weight prep (outside the hot path): transpose from torch layout and
    zero-pad hidden / d_out up to multiples of 128 lanes.

    Padding invariants that keep the forward exact after slicing:
      * padded w1 columns + padded b1 entries are 0  -> padded h lanes are relu(0)=0
      * padded w2 rows are 0                         -> they contribute nothing
      * padded w2 columns + padded b2 entries are 0  -> padded output lanes are relu(0)=0
    """
    hidden, d_in = w1.shape
    d_out = w2.shape[0]
    hp = _round_up(hidden, 128)
    op = _round_up(d_out, 128)

    w1_t = jnp.zeros((d_in, hp), param_dtype).at[:, :hidden].set(
        w1.T.astype(param_dtype))
    b1_p = jnp.zeros((1, hp), jnp.float32).at[:, :hidden].set(
        b1.astype(jnp.float32).reshape(1, hidden))
    w2_t = jnp.zeros((hp, op), param_dtype).at[:hidden, :d_out].set(
        w2.T.astype(param_dtype))
    b2_p = jnp.zeros((1, op), jnp.float32).at[:, :d_out].set(
        b2.astype(jnp.float32).reshape(1, d_out))
    return w1_t, b1_p, w2_t, b2_p, d_out


@functools.partial(jax.jit,
                   static_argnames=("d_out", "tb_max", "mxu_dtype", "out_dtype"))
def fashion_model_nonlinear(x, w1_t, b1_p, w2_t, b2_p, *, d_out,
                            tb_max=2048, mxu_dtype=None, out_dtype=jnp.float32):
    """x: (B, C, H, W) in its producer dtype (f32 or bf16).  Returns (B, d_out).

    mxu_dtype=None -> matmuls run in the weights' dtype (exact f32 path when weights
    are f32).  mxu_dtype=jnp.bfloat16 -> in-kernel bf16 operands + f32 accumulation
    (recommended on v7x; slight quantization vs the f32 PyTorch module).
    """
    B = x.shape[0]
    x2d = x.reshape(B, -1)            # nn.Flatten(start_dim=1); no dtype cast here
    d_in = x2d.shape[1]
    hp = w1_t.shape[1]
    op = w2_t.shape[1]
    mxu = np.dtype(mxu_dtype) if mxu_dtype is not None else np.dtype(w1_t.dtype)
    out_dt = np.dtype(out_dtype)

    # ---- batch tiling -----------------------------------------------------------
    # Rows padded to a multiple of 16 (sublane-clean for f32 and bf16).  Padding is
    # capped near 16 rows/tile (not round_up(B, tb)).  Large batches get >=2, even
    # tile counts so the "parallel" grid axis balances v7x's two TensorCores.
    rb = _round_up(B, 16)
    num_tiles = _cdiv(rb, tb_max)
    if num_tiles == 1 and rb >= 512:
        num_tiles = 2                               # v7x: one tile per TensorCore
    if num_tiles > 1 and num_tiles % 2:
        num_tiles += 1                              # v7x: balanced (even) tile count
    tb = _round_up(_cdiv(rb, num_tiles), 16)
    padded_b = tb * num_tiles
    if padded_b != B:
        # Single fused pad (+cast if dtypes ever differ) instead of astype + jnp.pad.
        x2d = jnp.zeros((padded_b, d_in), x2d.dtype).at[:B, :].set(x2d)

    x_item = x2d.dtype.itemsize
    w_item = np.dtype(w1_t.dtype).itemsize

    # ---- VMEM budget (explicit so v5e's 16 MiB scoped default never binds) -------
    vmem_need = (2 * tb * d_in * x_item             # double-buffered x tiles
                 + 2 * tb * op * out_dt.itemsize    # double-buffered out tiles
                 + 2 * (d_in * hp + hp * op) * w_item   # resident weights (x2 bufs)
                 + 4 * (hp + op) * 4)               # biases
    vmem_limit = int(min(vmem_need + (8 << 20), 64 << 20))

    cost = pl.CostEstimate(
        flops=2 * padded_b * (d_in * hp + hp * op),
        transcendentals=0,
        bytes_accessed=(padded_b * d_in * x_item                 # x
                        + (d_in * hp + hp * op) * w_item         # weights
                        + (hp + op) * 4                          # biases
                        + padded_b * op * out_dt.itemsize),      # output
    )

    kernel = functools.partial(_mlp_kernel, mxu_dtype=mxu)
    out = pl.pallas_call(
        kernel,
        out_shape=jax.ShapeDtypeStruct((padded_b, op), out_dt),
        grid_spec=pltpu.PrefetchScalarGridSpec(
            num_scalar_prefetch=0,
            grid=(num_tiles,),
            in_specs=[
                pl.BlockSpec((tb, d_in), lambda i: (i, 0)),   # x: batch-tiled, pipelined
                pl.BlockSpec((d_in, hp), lambda i: (0, 0)),   # w1: VMEM-resident
                pl.BlockSpec((1, hp), lambda i: (0, 0)),      # b1: VMEM-resident
                pl.BlockSpec((hp, op), lambda i: (0, 0)),     # w2: VMEM-resident
                pl.BlockSpec((1, op), lambda i: (0, 0)),      # b2: VMEM-resident
            ],
            out_specs=pl.BlockSpec((tb, op), lambda i: (i, 0)),  # lane-dense output
        ),
        compiler_params=pltpu.CompilerParams(
            dimension_semantics=("parallel",),       # v7x: shard batch over 2 TCs
            vmem_limit_bytes=vmem_limit,
            allow_input_fusion=[True, False, False, False, False],  # fuse pad into x DMA
        ),
        cost_estimate=cost,
    )(x2d, w1_t, b1_p, w2_t, b2_p)

    # Slice back to the true (B, d_out); padded lanes/rows are exactly zero.
    return out[:B, :d_out]


def _ref_forward(x, w1, b1, w2, b2):
    """Pure-JAX reference matching the PyTorch module exactly (f32)."""
    B = x.shape[0]
    x2d = x.reshape(B, -1)
    h = jnp.maximum(x2d @ w1.T + b1, 0.0)
    return jnp.maximum(h @ w2.T + b2, 0.0)


if __name__ == "__main__":
    # Small shapes consistent with the module:
    #   img 16x16, batch 2, single channel, hidden_units=32, output_shape=10
    img_w, img_h = 16, 16
    batch = 2
    hidden_units = 32
    output_shape = 10
    d_in = img_w * img_h

    key = jax.random.PRNGKey(0)
    kx, kw1, kb1, kw2, kb2, kx2 = jax.random.split(key, 6)

    x = jax.random.normal(kx, (batch, 1, img_h, img_w), dtype=jnp.float32)

    # Deterministic parameter init (uniform, Kaiming-style bounds like nn.Linear).
    bound1 = 1.0 / jnp.sqrt(d_in)
    w1 = jax.random.uniform(kw1, (hidden_units, d_in), jnp.float32, -bound1, bound1)
    b1 = jax.random.uniform(kb1, (hidden_units,), jnp.float32, -bound1, bound1)
    bound2 = 1.0 / jnp.sqrt(hidden_units)
    w2 = jax.random.uniform(kw2, (output_shape, hidden_units), jnp.float32, -bound2, bound2)
    b2 = jax.random.uniform(kb2, (output_shape,), jnp.float32, -bound2, bound2)

    # ---- f32 path (exact semantics of the PyTorch module) ------------------------
    w1_t, b1_p, w2_t, b2_p, d_out = prepare_params(w1, b1, w2, b2, jnp.float32)

    out = fashion_model_nonlinear(x, w1_t, b1_p, w2_t, b2_p, d_out=d_out)
    out = jax.block_until_ready(out)
    ref = _ref_forward(x, w1, b1, w2, b2)
    assert out.shape == (batch, output_shape)
    assert jnp.allclose(out, ref, atol=1e-5, rtol=1e-5), "f32 mismatch vs reference"

    # ---- multi-tile grid path: B=1040 -> 2 balanced tiles of 528 rows -------------
    big_batch = 1040
    xb = jax.random.normal(kx2, (big_batch, 1, img_h, img_w), dtype=jnp.float32)
    out_big = fashion_model_nonlinear(xb, w1_t, b1_p, w2_t, b2_p, d_out=d_out)
    out_big = jax.block_until_ready(out_big)
    ref_big = _ref_forward(xb, w1, b1, w2, b2)
    assert out_big.shape == (big_batch, output_shape)
    assert jnp.allclose(out_big, ref_big, atol=1e-4, rtol=1e-4), "tiled f32 mismatch"

    # ---- v7x-style path: keep x/weights f32 in HBM, bf16 MXU operands in-kernel ---
    out_mxu = fashion_model_nonlinear(xb, w1_t, b1_p, w2_t, b2_p, d_out=d_out,
                                      mxu_dtype=jnp.bfloat16)
    out_mxu = jax.block_until_ready(out_mxu)
    assert out_mxu.shape == (big_batch, output_shape)
    assert jnp.allclose(out_mxu, ref_big, atol=5e-2, rtol=5e-2), "bf16-MXU mismatch"

    # ---- bf16 weights in HBM (bandwidth saving on all chips, v5e included) --------
    w1_b, b1_b, w2_b, b2_b, _ = prepare_params(w1, b1, w2, b2, jnp.bfloat16)
    out_bf16 = fashion_model_nonlinear(xb, w1_b, b1_b, w2_b, b2_b, d_out=d_out)
    out_bf16 = jax.block_until_ready(out_bf16)
    assert out_bf16.shape == (big_batch, output_shape)
    assert jnp.allclose(out_bf16, ref_big, atol=5e-2, rtol=5e-2), "bf16-weight mismatch"

    print("KERNEL_OK")
</pallas_src>

<mosaic_0001>
module attributes {stable_mosaic.version = 11 : i64} {
  func.func @_mlp_kernel(%arg0: i32, %arg1: memref<16x256xf32, #tpu.memory_space<vmem>>, %arg2: memref<256x128xf32, #tpu.memory_space<vmem>>, %arg3: memref<1x128xf32, #tpu.memory_space<vmem>>, %arg4: memref<128x128xf32, #tpu.memory_space<vmem>>, %arg5: memref<1x128xf32, #tpu.memory_space<vmem>>, %arg6: memref<16x128xf32, #tpu.memory_space<vmem>>) attributes {dimension_semantics = [#tpu.dimension_semantics<parallel>], iteration_bounds = array<i64: 1>, scalar_prefetch = 0 : i64, scratch_operands = 0 : i64, tpu.core_type = #tpu.core_type<tc>, window_params = [{transform_indices = @transform_0, window_bounds = array<i64: 16, 256>}, {pipeline_mode = #tpu.pipeline_mode<synchronous>, transform_indices = @transform_1, window_bounds = array<i64: 256, 128>}, {pipeline_mode = #tpu.pipeline_mode<synchronous>, transform_indices = @transform_2, window_bounds = array<i64: 1, 128>}, {pipeline_mode = #tpu.pipeline_mode<synchronous>, transform_indices = @transform_3, window_bounds = array<i64: 128, 128>}, {pipeline_mode = #tpu.pipeline_mode<synchronous>, transform_indices = @transform_4, window_bounds = array<i64: 1, 128>}, {transform_indices = @transform_5, window_bounds = array<i64: 16, 128>}]} {
    %c0 = arith.constant 0 : index
    %c0_0 = arith.constant 0 : index
    %0 = vector.load %arg1[%c0, %c0_0] : memref<16x256xf32, #tpu.memory_space<vmem>>, vector<16x256xf32>
    %c0_1 = arith.constant 0 : index
    %c0_2 = arith.constant 0 : index
    %1 = vector.load %arg2[%c0_1, %c0_2] : memref<256x128xf32, #tpu.memory_space<vmem>>, vector<256x128xf32>
    %cst = arith.constant dense<0.000000e+00> : vector<16x128xf32>
    %2 = tpu.matmul %0, %1, %cst {dimension_numbers = #tpu.dot_dimension_numbers<[1], [0], [0], [1], [0, 0, 1, 1], [], []>} : vector<16x256xf32>, vector<256x128xf32>, vector<16x128xf32> -> vector<16x128xf32>
    %c0_3 = arith.constant 0 : index
    %c0_4 = arith.constant 0 : index
    %3 = vector.load %arg3[%c0_3, %c0_4] : memref<1x128xf32, #tpu.memory_space<vmem>>, vector<1x128xf32>
    %4 = vector.broadcast %3 : vector<1x128xf32> to vector<16x128xf32>
    %5 = arith.addf %2, %4 : vector<16x128xf32>
    %cst_5 = arith.constant 0.000000e+00 : f32
    %6 = vector.broadcast %cst_5 : f32 to vector<16x128xf32>
    %7 = arith.maximumf %5, %6 : vector<16x128xf32>
    %c0_6 = arith.constant 0 : index
    %c0_7 = arith.constant 0 : index
    %8 = vector.load %arg4[%c0_6, %c0_7] : memref<128x128xf32, #tpu.memory_space<vmem>>, vector<128x128xf32>
    %cst_8 = arith.constant dense<0.000000e+00> : vector<16x128xf32>
    %9 = tpu.matmul %7, %8, %cst_8 {dimension_numbers = #tpu.dot_dimension_numbers<[1], [0], [0], [1], [0, 0, 1, 1], [], []>} : vector<16x128xf32>, vector<128x128xf32>, vector<16x128xf32> -> vector<16x128xf32>
    %c0_9 = arith.constant 0 : index
    %c0_10 = arith.constant 0 : index
    %10 = vector.load %arg5[%c0_9, %c0_10] : memref<1x128xf32, #tpu.memory_space<vmem>>, vector<1x128xf32>
    %11 = vector.broadcast %10 : vector<1x128xf32> to vector<16x128xf32>
    %12 = arith.addf %9, %11 : vector<16x128xf32>
    %cst_11 = arith.constant 0.000000e+00 : f32
    %13 = vector.broadcast %cst_11 : f32 to vector<16x128xf32>
    %14 = arith.maximumf %12, %13 : vector<16x128xf32>
    %c0_12 = arith.constant 0 : index
    %c0_13 = arith.constant 0 : index
    %15 = vector.load %arg6[%c0_12, %c0_13] : memref<16x128xf32, #tpu.memory_space<vmem>>, vector<16x128xf32>
    tpu.vector_store %arg6[%c0_12, %c0_13], %14 {strides = array<i32>} : memref<16x128xf32, #tpu.memory_space<vmem>>, vector<16x128xf32>,
    return
  }
  func.func @transform_0(%arg0: i32) -> (i32, i32) {
    %c0_i32 = arith.constant 0 : i32
    %c0_i32_0 = arith.constant 0 : i32
    return %arg0, %c0_i32 : i32, i32
  }
  func.func @transform_1(%arg0: i32) -> (i32, i32) {
    %c0_i32 = arith.constant 0 : i32
    %c0_i32_0 = arith.constant 0 : i32
    %c0_i32_1 = arith.constant 0 : i32
    return %c0_i32, %c0_i32_0 : i32, i32
  }
  func.func @transform_2(%arg0: i32) -> (i32, i32) {
    %c0_i32 = arith.constant 0 : i32
    %c0_i32_0 = arith.constant 0 : i32
    %c0_i32_1 = arith.constant 0 : i32
    return %c0_i32, %c0_i32_0 : i32, i32
  }
  func.func @transform_3(%arg0: i32) -> (i32, i32) {
    %c0_i32 = arith.constant 0 : i32
    %c0_i32_0 = arith.constant 0 : i32
    %c0_i32_1 = arith.constant 0 : i32
    return %c0_i32, %c0_i32_0 : i32, i32
  }
  func.func @transform_4(%arg0: i32) -> (i32, i32) {
    %c0_i32 = arith.constant 0 : i32
    %c0_i32_0 = arith.constant 0 : i32
    %c0_i32_1 = arith.constant 0 : i32
    return %c0_i32, %c0_i32_0 : i32, i32
  }
  func.func @transform_5(%arg0: i32) -> (i32, i32) {
    %c0_i32 = arith.constant 0 : i32
    %c0_i32_0 = arith.constant 0 : i32
    return %arg0, %c0_i32 : i32, i32
  }
}

</mosaic_0001>

<bundles_post_ra>
// kernel: fashion_model_nonlinear.2
= control target key start
LH: loop header
LB: loop body
LE: loop exit
PB: predicated region body
PF: predicated region fallthrough
CT: control target
= control target key end

     0   :  { %s527_s0 = inlined_call_operand.hbm [shape: f32[256,128], index: 0, kind: input, shape index: {}]   ;;  %s528_s1 = inlined_call_operand.vmem [shape: f32[1,128], index: 1, kind: input, shape index: {}]   ;;  %s529_s2 = inlined_call_operand.hbm [shape: f32[128,128], index: 2, kind: input, shape index: {}]   ;;  %s530_s3 = inlined_call_operand.vmem [shape: f32[1,128], index: 3, kind: input, shape index: {}]   ;;  %s531_s4 = inlined_call_operand.vmem [shape: f32[2,256], index: 4, kind: input, shape index: {}]   ;;  %s532_s5 = inlined_call_operand.<no memory space> [shape: f32[], index: 5, kind: input, shape index: {}]   ;;  %s533_s6 = inlined_call_operand.vmem [shape: f32[16,128], index: 6, kind: output, shape index: {}]  }
   0x1   :  { %v490_v0 = vstv %s532_s5 }
   0x2   :  { %12 = vsyncpa [#allocation8], 0 }
   0x3   :  { %13 = vsyncpa [#allocation10], 0  ;;  %s448_s23 = smov [#allocation7]  }
   0x4   :  { %s21_s24 = sshll.u32 %s448_s23, 4  ;;  %s22_s24 = int_to_ptr.vmem [resolvable:$true] %s21_s24 }
   0x5   :  { %s412_s25 = scalar_lea.vmem %s22_s24, 4096  ;;  %p417_p1 = scmp.lt.s32.totalorder %s22_s24, %s22_s24 }
   0x6   :  { %p413_p0 = scmp.ne.s32.totalorder %s22_s24, %s412_s25  ;;  %p418_p2 = scmp.lt.s32.totalorder %s412_s25, %s412_s25 }
   0x8   :  { %p419_p3 = por %p418_p2, %p417_p1 }
   0xa   :  { %p420_p4 = pnand %p419_p3, %p413_p0 }
   0xc   :  { %423 = shalt.err (!%p420_p4)
}
   0xd   :  { %s449_s26 = smov 128   ;;  %s450_s27 = smov 8  }
   0xe   :  { %27 = dma.hbm_to_vmem [thread:$0]  %s527_s0, 4096, %s22_s24, [#allocation8], %s449_s26, %s449_s26, %s450_s27  }
   0xf   :  { %s451_s5 = smov [#allocation9]  }
  0x10   :  { %s35_s30 = sshll.u32 %s451_s5, 4  ;;  %s36_s30 = int_to_ptr.vmem [resolvable:$true] %s35_s30 }
  0x11   :  { %s432_s7 = scalar_lea.vmem %s36_s30, 2048  ;;  %p437_p6 = scmp.lt.s32.totalorder %s36_s30, %s36_s30 }
  0x12   :  { %p433_p5 = scmp.ne.s32.totalorder %s36_s30, %s432_s7  ;;  %p438_p7 = scmp.lt.s32.totalorder %s432_s7, %s432_s7 }
  0x14   :  { %p439_p8 = por %p438_p7, %p437_p6 }
  0x16   :  { %p440_p9 = pnand %p439_p8, %p433_p5 }
  0x18   :  { %443 = shalt.err (!%p440_p9)
}
  0x19   :  { %41 = dma.hbm_to_vmem [thread:$0]  %s529_s2, 2048, %s36_s30, [#allocation10], %s449_s26, %s449_s26, %s450_s27  }
  0x1a   :  { %444 = dma.done.wait [#allocation8], 4096  }
  0x1b   :  { %445 = vsyncadd [#allocation8], 4294963200 }
  0x1c   :  { %446 = dma.done.wait [#allocation10], 2048  }
  0x1d   :  { %447 = vsyncadd [#allocation10], 4294965248  ;;  %v113_v1 = vld [vmem:[#allocation7 + $0xf8] sm:$0xff]  ;;  %v112_v3 = vld [vmem:[#allocation7 + $0xf0] sm:$0xff]  ;;  %v51_v4 = vlaneseq }
  0x1e   :  { %v97_v2 = vld [vmem:[#allocation7 + $0x78] sm:$0xff]  ;;  %309 = vmatprep.subr.mxu0 %v113_v1  ;;  %v96_v5 = vld [vmem:[#allocation7 + $0x70] sm:$0xff]  ;;  %v111_v6 = vld [vmem:[#allocation7 + $0xe8] sm:$0xff] }
  0x1f   :  { %310 = vmatpush3.msra.mxu0 %v97_v2  ;;  %v95_v7 = vld [vmem:[#allocation7 + $0x68] sm:$0xff]  ;;  %v110_v8 = vld [vmem:[#allocation7 + $0xe0] sm:$0xff]  ;;  %v498_v9 = vshrl.u32 %v51_v4, 7  ;;  %v109_v11 = vld [vmem:[#allocation7 + $0xd8] sm:$0xff] }
  0x20   :  { %311 = vmatprep.subr.mxu0 %v112_v3  ;;  %v94_v10 = vld [vmem:[#allocation7 + $0x60] sm:$0xff]  ;;  %v93_v12 = vld [vmem:[#allocation7 + $0x58] sm:$0xff]  ;;  %v108_v13 = vld [vmem:[#allocation7 + $0xd0] sm:$0xff] }
  0x21   :  { %312 = vmatpush3.msra.mxu0 %v96_v5  ;;  %vm54_vm0 = vcmp.lt.s32.totalorder %v498_v9, 2  ;;  %v92_v14 = vld [vmem:[#allocation7 + $0x50] sm:$0xff]  ;;  %v107_v15 = vld [vmem:[#allocation7 + $0xc8] sm:$0xff]  ;;  %v306_v16 = vld [vmem:[%s531_s4 + $0x2] sm:$0x3] }
  0x22   :  { %313 = vmatprep.subr.mxu0 %v111_v6  ;;  %v91_v17 = vld [vmem:[#allocation7 + $0x48] sm:$0xff]  ;;  %v65_v18 = vsel %vm54_vm0, %v306_v16, %v490_v0  ;;  %v213_v19 = vld [vmem:[#allocation9 + $0x78] sm:$0xff]  ;;  %v106_v20 = vld [vmem:[#allocation7 + $0xc0] sm:$0xff] }
  0x23   :  { %314 = vmatpush3.msra.mxu0 %v95_v7  ;;  %185 = vmatprep.mubr.f32.mxu0 %v65_v18  ;;  %v212_v21 = vld [vmem:[#allocation9 + $0x70] sm:$0xff]  ;;  %v90_v22 = vld [vmem:[#allocation7 + $0x40] sm:$0xff]  ;;  %v105_v23 = vld [vmem:[#allocation7 + $0xb8] sm:$0xff] }
  0x24   :  { %315 = vmatprep.subr.mxu0 %v110_v8  ;;  %365 = vmatprep.subr.mxu1 %v213_v19  ;;  %v211_v24 = vld [vmem:[#allocation9 + $0x68] sm:$0xff]  ;;  %v89_v25 = vld [vmem:[#allocation7 + $0x38] sm:$0xff]  ;;  %v104_v26 = vld [vmem:[#allocation7 + $0xb0] sm:$0xff] }
  0x25   :  { %316 = vmatpush3.msra.mxu0 %v94_v10  ;;  %366 = vmatpush3.msra.mxu1 %v213_v19  ;;  %v210_v27 = vld [vmem:[#allocation9 + $0x60] sm:$0xff]  ;;  %v88_v28 = vld [vmem:[#allocation7 + $0x30] sm:$0xff]  ;;  %v103_v29 = vld [vmem:[#allocation7 + $0xa8] sm:$0xff] }
  0x26   :  { %317 = vmatprep.subr.mxu0 %v109_v11  ;;  %367 = vmatprep.subr.mxu1 %v212_v21  ;;  %v209_v30 = vld [vmem:[#allocation9 + $0x58] sm:$0xff]  ;;  %v87_v31 = vld [vmem:[#allocation7 + $0x28] sm:$0xff]  ;;  %v102_v32 = vld [vmem:[#allocation7 + $0xa0] sm:$0xff] }
  0x27   :  { %318 = vmatpush3.msra.mxu0 %v93_v12  ;;  %368 = vmatpush3.msra.mxu1 %v212_v21  ;;  %v208_v33 = vld [vmem:[#allocation9 + $0x50] sm:$0xff]  ;;  %v86_v34 = vld [vmem:[#allocation7 + $0x20] sm:$0xff]  ;;  %v101_v35 = vld [vmem:[#allocation7 + $0x98] sm:$0xff] }
  0x28   :  { %319 = vmatprep.subr.mxu0 %v108_v13  ;;  %369 = vmatprep.subr.mxu1 %v211_v24  ;;  %v207_v36 = vld [vmem:[#allocation9 + $0x48] sm:$0xff]  ;;  %v85_v37 = vld [vmem:[#allocation7 + $0x18] sm:$0xff]  ;;  %v100_v38 = vld [vmem:[#allocation7 + $0x90] sm:$0xff] }
  0x29   :  { %320 = vmatpush3.msra.mxu0 %v92_v14  ;;  %370 = vmatpush3.msra.mxu1 %v211_v24  ;;  %v206_v39 = vld [vmem:[#allocation9 + $0x40] sm:$0xff]  ;;  %v84_v40 = vld [vmem:[#allocation7 + $0x10] sm:$0xff]  ;;  %v99_v41 = vld [vmem:[#allocation7 + $0x88] sm:$0xff] }
  0x2a   :  { %321 = vmatprep.subr.mxu0 %v107_v15  ;;  %371 = vmatprep.subr.mxu1 %v210_v27  ;;  %v205_v42 = vld [vmem:[#allocation9 + $0x38] sm:$0xff]  ;;  %v83_v43 = vld [vmem:[#allocation7 + $0x8] sm:$0xff]  ;;  %v50_v44 = vld [vmem:[%s531_s4] sm:$0x3] }
  0x2b   :  { %322 = vmatpush3.msra.mxu0 %v91_v17  ;;  %372 = vmatpush3.msra.mxu1 %v210_v27  ;;  %v98_v45 = vld [vmem:[#allocation7 + $0x80] sm:$0xff]  ;;  %v204_v46 = vld [vmem:[#allocation9 + $0x30] sm:$0xff]  ;;  %v55_v48 = vsel %vm54_vm0, %v50_v44, %v490_v0  ;;  %v203_v49 = vld [vmem:[#allocation9 + $0x28] sm:$0xff] }
  0x2c   :  { %323 = vmatprep.subr.mxu0 %v106_v20  ;;  %373 = vmatprep.subr.mxu1 %v209_v30  ;;  %v82_v47 = vld [vmem:[#allocation7] sm:$0xff]  ;;  %v201_v51 = vld [vmem:[#allocation9 + $0x18] sm:$0xff]  ;;  %v200_v52 = vld [vmem:[#allocation9 + $0x10] sm:$0xff] }
  0x2d   :  { %324 = vmatpush3.msra.mxu0 %v90_v22  ;;  %374 = vmatpush3.msra.mxu1 %v209_v30  ;;  %v202_v50 = vld [vmem:[#allocation9 + $0x20] sm:$0xff]  ;;  %v199_v53 = vld [vmem:[#allocation9 + $0x8] sm:$0xff] }
  0x2e   :  { %325 = vmatprep.subr.mxu0 %v105_v23  ;;  %375 = vmatprep.subr.mxu1 %v208_v33  ;;  %v198_v54 = vld [vmem:[#allocation9] sm:$0xff] }
  0x2f   :  { %326 = vmatpush3.msra.mxu0 %v89_v25  ;;  %376 = vmatpush3.msra.mxu1 %v208_v33  ;;  %v307_v57 = vld [vmem:[%s528_s1] ss:$0 sm:$0xff] }
  0x30   :  { %327 = vmatprep.subr.mxu0 %v104_v26  ;;  %377 = vmatprep.subr.mxu1 %v207_v36  ;;  %v308_v2 = vld [vmem:[%s530_s3] ss:$0 sm:$0xff] }
  0x31   :  { %328 = vmatpush3.msra.mxu0 %v88_v28  ;;  %378 = vmatpush3.msra.mxu1 %v207_v36 }
  0x32   :  { %329 = vmatprep.subr.mxu0 %v103_v29  ;;  %379 = vmatprep.subr.mxu1 %v206_v39 }
  0x33   :  { %330 = vmatpush3.msra.mxu0 %v87_v31  ;;  %380 = vmatpush3.msra.mxu1 %v206_v39 }
  0x34   :  { %331 = vmatprep.subr.mxu0 %v102_v32  ;;  %381 = vmatprep.subr.mxu1 %v205_v42 }
  0x35   :  { %332 = vmatpush3.msra.mxu0 %v86_v34  ;;  %382 = vmatpush3.msra.mxu1 %v205_v42 }
  0x36   :  { %333 = vmatprep.subr.mxu0 %v101_v35  ;;  %383 = vmatprep.subr.mxu1 %v204_v46 }
  0x37   :  { %334 = vmatpush3.msra.mxu0 %v85_v37  ;;  %384 = vmatpush3.msra.mxu1 %v204_v46 }
  0x38   :  { %335 = vmatprep.subr.mxu0 %v100_v38  ;;  %385 = vmatprep.subr.mxu1 %v203_v49 }
  0x39   :  { %336 = vmatpush3.msra.mxu0 %v84_v40  ;;  %386 = vmatpush3.msra.mxu1 %v203_v49 }
  0x3a   :  { %337 = vmatprep.subr.mxu0 %v99_v41  ;;  %387 = vmatprep.subr.mxu1 %v202_v50 }
  0x3b   :  { %338 = vmatpush3.msra.mxu0 %v83_v43  ;;  %388 = vmatpush3.msra.mxu1 %v202_v50 }
  0x3c   :  { %339 = vmatprep.subr.mxu0 %v98_v45  ;;  %389 = vmatprep.subr.mxu1 %v201_v51 }
  0x3d   :  { %340 = vmatpush3.msra.mxu0 %v82_v47  ;;  %390 = vmatpush3.msra.mxu1 %v201_v51 }
  0x3e   :  { %186 = vmatmul.mubr.f32.vlgmr.msra.gmra.mxu0 %v55_v48  ;;  %391 = vmatprep.subr.mxu1 %v200_v52 }
  0x3f   :  { %190 = vmatprep.mubr.f32.mxu0 %v490_v0  ;;  %392 = vmatpush3.msra.mxu1 %v200_v52 }
  0x40   :  { %393 = vmatprep.subr.mxu1 %v199_v53 }
  0x41   :  { %394 = vmatpush3.msra.mxu1 %v199_v53 }
  0x42   :  { %191 = vmatmul.mubr.f32.gmra.mxu0 %v490_v0  ;;  %395 = vmatprep.subr.mxu1 %v198_v54 }
  0x43   :  { %396 = vmatpush3.msra.mxu1 %v198_v54 }
  0xfe   :  { %v341_v55 = vpop.f32.mrf.mxu0 }
 0x100   :  { %v342_v56 = vpop.f32.mrf.mxu0 }
 0x101   :  { %v343_v58 = vadd.f32 %v342_v56, %v341_v55 }
 0x102   :  { %v344_v59 = vpop.f32.mrf.mxu0 }
 0x103   :  { %v188_v60 = vadd.f32 %v343_v58, %v307_v57 }
 0x104   :  { %v345_v61 = vpop.f32.mrf.mxu0 }
 0x105   :  { %v346_v62 = vadd.f32 %v345_v61, %v344_v59  ;;  %v196_v63 = vmax.f32 %v188_v60, 0.0 }
 0x107   :  { %v193_v0 = vadd.f32 %v346_v62, %v307_v57  ;;  %397 = vmatprep.mubr.f32.mxu1 %v196_v63 }
 0x109   :  { %v197_v1 = vmax.f32 %v193_v0, 0.0 }
 0x10b   :  { %398 = vmatmul.mubr.f32.vlgmr.msra.gmra.mxu1 %v197_v1 }
 0x1cb   :  { %v399_v3 = vpop.f32.mrf.mxu1 }
 0x1cc   :  { %v293_v4 = vadd.f32 %v399_v3, %v308_v2 }
 0x1cd   :  { %v287_v5 = vpop.f32.mrf.mxu1 }
 0x1ce   :  { %v297_v6 = vmax.f32 %v293_v4, 0.0  ;;  %v288_v7 = vadd.f32 %v308_v2, %v287_v5 }
 0x1d0   :  { %299 = vst [vmem:[%s533_s6 + $0x8] sm:$0xff] %v297_v6  ;;  %v296_v8 = vmax.f32 %v288_v7, 0.0 }
 0x1d2   :  { %298 = vst [vmem:[%s533_s6] sm:$0xff] %v296_v8 }
 0x1d3   :  { %304 = vsyncpa [#allocation8], 1 }
 0x1d4   :  { %305 = vsyncpa [#allocation10], 1 }

</bundles_post_ra>
